<compile_context>
chip_gen: v7x
topology: tpu7x:2x2x1
jax: 0.10.0
libtpu: 0.0.40
codegen_flags: <defaults>
</compile_context>

<pallas_src>
import functools

import jax
import jax.numpy as jnp
from jax.experimental import pallas as pl
from jax.experimental.pallas import tpu as pltpu

_LANES = 128
# Fast-path block: (2, 2048, 128) f32 = 2 MiB per operand per grid step.
# Input + output, double-buffered -> 8 MiB VMEM: inside the default scoped
# limit on v5e (16 MiB), v6e/v7x (32 MiB), and big enough that the ~0.35 us
# per-grid-step overhead is small next to the ~3 us of HBM time per step.
_DEFAULT_BLOCK_ROWS = 2048


def _rotation_kernel(cs_ref, x_ref, o_ref):
    """cs_ref: (2,) f32 in SMEM = [cos(w), sin(w)].
    x_ref / o_ref: (2, BR, 128) (fast path) or (2, BN) (fallback) f32 VMEM tiles."""
    c = cs_ref[0]
    s = cs_ref[1]
    x0 = x_ref[0]
    x1 = x_ref[1]
    o_ref[0] = c * x0 - s * x1
    o_ref[1] = s * x0 + c * x1


def _rotate(cs, x, block_shape, grid):
    smem = pl.BlockSpec(memory_space=pltpu.MemorySpace.SMEM)
    if x.ndim == 3:
        blk = pl.BlockSpec(block_shape, lambda i: (0, i, 0))
    else:
        blk = pl.BlockSpec(block_shape, lambda i: (0, i))
    return pl.pallas_call(
        _rotation_kernel,
        out_shape=jax.ShapeDtypeStruct(x.shape, x.dtype),
        grid=grid,
        in_specs=[smem, blk],
        out_specs=blk,
        compiler_params=pltpu.CompilerParams(
            dimension_semantics=("parallel",),  # shard grid across v7x's 2 TCs
        ),
    )(cs, x)


def my_layer_rotation(weight, x, *, block_rows=_DEFAULT_BLOCK_ROWS):
    """weight: (1,) angle; x: (2, N).  Returns (2*N,) == torch.cat((x0', x1'), 0)."""
    assert x.ndim == 2 and x.shape[0] == 2
    n = x.shape[1]
    x = x.astype(jnp.float32)

    # cos/sin computed once outside the kernel; passed as SMEM scalars.
    w = weight.reshape(()).astype(jnp.float32)
    cs = jnp.stack([jnp.cos(w), jnp.sin(w)])

    if n % _LANES == 0:
        # Fast path: free (bitcast) view as (2, R, 128) -> sublane/lane-dense tiles.
        r = n // _LANES
        x3 = x.reshape(2, r, _LANES)
        br = r if r <= block_rows else block_rows
        out = _rotate(cs, x3, (2, br, _LANES), grid=(pl.cdiv(r, br),))
    else:
        # Fallback: raw (2, N) layout (sublane-sparse tiles, still single-pass).
        bn = n if n <= block_rows * _LANES else block_rows * _LANES
        out = _rotate(cs, x, (2, bn), grid=(pl.cdiv(n, bn),))

    # Row-major flatten of (2, ...) == torch.cat((row0, row1), 0); free bitcast.
    return out.reshape(2 * n)


def _reference(weight, x):
    c = jnp.cos(weight[0])
    s = jnp.sin(weight[0])
    return jnp.concatenate([c * x[0] - s * x[1], s * x[0] + c * x[1]], axis=0)


if __name__ == "__main__":
    key = jax.random.PRNGKey(0)
    k1, k2, k3 = jax.random.split(key, 3)

    rot = jax.jit(my_layer_rotation)
    rot_tiny_blocks = jax.jit(functools.partial(my_layer_rotation, block_rows=8))

    # Parameter: shape (1,), zero-initialized as in the PyTorch module.
    weight0 = jnp.zeros((1,), dtype=jnp.float32)
    weight1 = jnp.array([0.37], dtype=jnp.float32)

    # 1) Small aligned input -> fast path, single block (N = 256 points).
    x1 = jax.random.normal(k1, (2, 256), dtype=jnp.float32)
    o1 = jax.block_until_ready(rot(weight0, x1))
    assert o1.shape == (512,)
    assert jnp.allclose(o1, _reference(weight0, x1), atol=1e-6, rtol=1e-6)

    # 2) Aligned input with tiny blocks -> exercises the gridded fast path,
    #    including a ragged final block (N = 33*128 -> R = 33 rows, BR = 8, grid = 5).
    x2 = jax.random.normal(k2, (2, 33 * 128), dtype=jnp.float32)
    o2 = jax.block_until_ready(rot_tiny_blocks(weight1, x2))
    assert o2.shape == (2 * 33 * 128,)
    assert jnp.allclose(o2, _reference(weight1, x2), atol=1e-5, rtol=1e-5)

    # 3) N not a multiple of 128 -> (2, N) fallback path (N = 1000).
    x3 = jax.random.normal(k3, (2, 1000), dtype=jnp.float32)
    o3 = jax.block_until_ready(rot(weight1, x3))
    assert o3.shape == (2000,)
    assert jnp.allclose(o3, _reference(weight1, x3), atol=1e-5, rtol=1e-5)

    print("KERNEL_OK")
</pallas_src>

<mosaic_0001>
module attributes {stable_mosaic.version = 11 : i64} {
  func.func @_rotation_kernel(%arg0: i32, %arg1: memref<2xf32, #tpu.memory_space<smem>>, %arg2: memref<2x2x128xf32, #tpu.memory_space<vmem>>, %arg3: memref<2x2x128xf32, #tpu.memory_space<vmem>>) attributes {dimension_semantics = [#tpu.dimension_semantics<parallel>], iteration_bounds = array<i64: 1>, scalar_prefetch = 0 : i64, scratch_operands = 0 : i64, tpu.core_type = #tpu.core_type<tc>, window_params = [{transform_indices = @transform_0, window_bounds = array<i64: 2>}, {transform_indices = @transform_1, window_bounds = array<i64: 2, 2, 128>}, {transform_indices = @transform_2, window_bounds = array<i64: 2, 2, 128>}]} {
    %c0 = arith.constant 0 : index
    %0 = memref.load %arg1[%c0] : memref<2xf32, #tpu.memory_space<smem>>
    %c1 = arith.constant 1 : index
    %1 = memref.load %arg1[%c1] : memref<2xf32, #tpu.memory_space<smem>>
    %c0_0 = arith.constant 0 : index
    %c0_1 = arith.constant 0 : index
    %c0_2 = arith.constant 0 : index
    %2 = vector.load %arg2[%c0_0, %c0_1, %c0_2] : memref<2x2x128xf32, #tpu.memory_space<vmem>>, vector<1x2x128xf32>
    %3 = vector.shape_cast %2 : vector<1x2x128xf32> to vector<2x128xf32>
    %c1_3 = arith.constant 1 : index
    %c0_4 = arith.constant 0 : index
    %c0_5 = arith.constant 0 : index
    %4 = vector.load %arg2[%c1_3, %c0_4, %c0_5] : memref<2x2x128xf32, #tpu.memory_space<vmem>>, vector<1x2x128xf32>
    %5 = vector.shape_cast %4 : vector<1x2x128xf32> to vector<2x128xf32>
    %6 = vector.broadcast %0 : f32 to vector<2x128xf32>
    %7 = arith.mulf %6, %3 : vector<2x128xf32>
    %8 = vector.broadcast %1 : f32 to vector<2x128xf32>
    %9 = arith.mulf %8, %5 : vector<2x128xf32>
    %10 = arith.subf %7, %9 : vector<2x128xf32>
    %c0_6 = arith.constant 0 : index
    %c0_7 = arith.constant 0 : index
    %c0_8 = arith.constant 0 : index
    %11 = vector.load %arg3[%c0_6, %c0_7, %c0_8] : memref<2x2x128xf32, #tpu.memory_space<vmem>>, vector<1x2x128xf32>
    %12 = vector.shape_cast %11 : vector<1x2x128xf32> to vector<2x128xf32>
    %13 = vector.shape_cast %10 : vector<2x128xf32> to vector<1x2x128xf32>
    tpu.vector_store %arg3[%c0_6, %c0_7, %c0_8], %13 {strides = array<i32>} : memref<2x2x128xf32, #tpu.memory_space<vmem>>, vector<1x2x128xf32>,
    %14 = vector.broadcast %1 : f32 to vector<2x128xf32>
    %15 = arith.mulf %14, %3 : vector<2x128xf32>
    %16 = vector.broadcast %0 : f32 to vector<2x128xf32>
    %17 = arith.mulf %16, %5 : vector<2x128xf32>
    %18 = arith.addf %15, %17 : vector<2x128xf32>
    %c1_9 = arith.constant 1 : index
    %c0_10 = arith.constant 0 : index
    %c0_11 = arith.constant 0 : index
    %19 = vector.load %arg3[%c1_9, %c0_10, %c0_11] : memref<2x2x128xf32, #tpu.memory_space<vmem>>, vector<1x2x128xf32>
    %20 = vector.shape_cast %19 : vector<1x2x128xf32> to vector<2x128xf32>
    %21 = vector.shape_cast %18 : vector<2x128xf32> to vector<1x2x128xf32>
    tpu.vector_store %arg3[%c1_9, %c0_10, %c0_11], %21 {strides = array<i32>} : memref<2x2x128xf32, #tpu.memory_space<vmem>>, vector<1x2x128xf32>,
    return
  }
  func.func @transform_0(%arg0: i32) -> i32 {
    %c0_i32 = arith.constant 0 : i32
    %c0_i32_0 = arith.constant 0 : i32
    return %c0_i32 : i32
  }
  func.func @transform_1(%arg0: i32) -> (i32, i32, i32) {
    %c0_i32 = arith.constant 0 : i32
    %c0_i32_0 = arith.constant 0 : i32
    %c0_i32_1 = arith.constant 0 : i32
    return %c0_i32, %arg0, %c0_i32_0 : i32, i32, i32
  }
  func.func @transform_2(%arg0: i32) -> (i32, i32, i32) {
    %c0_i32 = arith.constant 0 : i32
    %c0_i32_0 = arith.constant 0 : i32
    %c0_i32_1 = arith.constant 0 : i32
    return %c0_i32, %arg0, %c0_i32_0 : i32, i32, i32
  }
}

</mosaic_0001>

<bundles_post_ra>
// kernel: my_layer_rotation.1
= control target key start
LH: loop header
LB: loop body
LE: loop exit
PB: predicated region body
PF: predicated region fallthrough
CT: control target
= control target key end

     0   :  { %7 = vsyncpa [#allocation4], 0  ;;  %s142_s0 = inlined_call_operand.vmem [shape: f32[2], index: 0, kind: input, shape index: {}]   ;;  %s143_s1 = inlined_call_operand.vmem [shape: f32[2,2,128], index: 1, kind: input, shape index: {}]   ;;  %s144_s2 = inlined_call_operand.hbm [shape: f32[2,2,128], index: 2, kind: output, shape index: {}]  }
   0x1   :  { %8 = vsyncpa [#allocation3], 0  ;;  %s15_s11 = sshll.u32 %s142_s0, 4  ;;  %s16_s11 = int_to_ptr.vmem [resolvable:$true] %s15_s11 }
   0x2   :  { %s64_s12 = scalar_lea.vmem %s16_s11, 16  ;;  %p69_p1 = scmp.lt.s32.totalorder %s16_s11, %s16_s11 }
   0x3   :  { %p65_p0 = scmp.ne.s32.totalorder %s16_s11, %s64_s12  ;;  %p70_p2 = scmp.lt.s32.totalorder %s64_s12, %s64_s12 }
   0x5   :  { %p71_p3 = por %p70_p2, %p69_p1 }
   0x7   :  { %p72_p4 = pnand %p71_p3, %p65_p0 }
   0x9   :  { %75 = shalt.err (!%p72_p4)
}
   0xa   :  { %s102_s13 = smov [#allocation2]  }
   0xb   :  { %18 = dma.vmem_to_smem %s16_s11, 16, %s102_s13, [#allocation4]  }
   0xc   :  { %98 = dma.done.wait [#allocation4], 16  }
   0xd   :  { %99 = vsyncadd [#allocation4], 4294967280 }
   0xe   :  { %24 = sfence }
   0xf   :  { %s25_s14 = sld [smem:[#allocation2]]  ;;  %s58_s15 = sld [smem:[#allocation2 + $0x1]]  ;;  %v27_v0 = vld [vmem:[%s143_s1] sm:$0x3]  ;;  %v59_v1 = vld [vmem:[%s143_s1 + $0x2] sm:$0x3] }
  0x10   :  { %s103_s19 = smov [#allocation5]  }
  0x11   :  { %s46_s20 = sshll.u32 %s103_s19, 4  ;;  %s47_s20 = int_to_ptr.vmem [resolvable:$true] %s46_s20 }
  0x12   :  { %s76_s21 = scalar_lea.vmem %s47_s20, 64  ;;  %p81_p6 = scmp.lt.s32.totalorder %s47_s20, %s47_s20 }
  0x13   :  { %p77_p5 = scmp.ne.s32.totalorder %s47_s20, %s76_s21  ;;  %p82_p7 = scmp.lt.s32.totalorder %s76_s21, %s76_s21 }
  0x15   :  { %v30_v2 = vstv %s25_s14  ;;  %v32_v3 = vstv %s58_s15  ;;  %p83_p8 = por %p82_p7, %p81_p6 }
  0x16   :  { %v31_v4 = vmul.f32 %v30_v2, %v27_v0  ;;  %v33_v5 = vmul.f32 %v59_v1, %v32_v3  ;;  %v36_v6 = vmul.f32 %v32_v3, %v27_v0  ;;  %v37_v7 = vmul.f32 %v59_v1, %v30_v2 }
  0x17   :  { %p84_p9 = pnand %p83_p8, %p77_p5 }
  0x18   :  { %v34_v8 = vsub.f32 %v31_v4, %v33_v5  ;;  %v38_v9 = vadd.f32 %v37_v7, %v36_v6 }
  0x1a   :  { %35 = vst [vmem:[#allocation5] sm:$0x3] %v34_v8  ;;  %40 = vst [vmem:[#allocation5 + $0x2] sm:$0x3] %v38_v9 }
  0x1b   :  { %87 = shalt.err (!%p84_p9)
}
  0x1c   :  { %s88_s23 = scalar_lea.hbm %s144_s2, 64 }
  0x1d   :  { %p89_p10 = scmp.ne.s32.totalorder %s144_s2, %s88_s23  ;;  %p92_p11 = scmp.lt.u32.totalorder %s88_s23, %s144_s2 }
  0x1f   :  { %p94_p12 = pnand %p92_p11, %p89_p10 }
  0x21   :  { %97 = shalt.err (!%p94_p12)
}
  0x22   :  { %s104_s28 = smov 32   ;;  %s105_s29 = smov 2  }
  0x23   :  { %52 = dma.vmem_to_hbm [thread:$0]  %s47_s20, 64, %s144_s2, [#allocation3], %s104_s28, %s104_s28, %s105_s29  }
  0x24   :  { %100 = dma.done.wait [#allocation3], 64  }
  0x25   :  { %101 = vsyncadd [#allocation3], 4294967232 }
  0x26   :  { %56 = vsyncpa [#allocation3], 1 }
  0x27   :  { %57 = vsyncpa [#allocation4], 1 }

</bundles_post_ra>
